<compile_context>
chip_gen: v7x
topology: tpu7x:2x2x1
jax: 0.10.0
libtpu: 0.0.40
codegen_flags: <defaults>
</compile_context>

<pallas_src>
import jax
import jax.numpy as jnp
from jax.experimental import pallas as pl
from jax.experimental.pallas import tpu as pltpu


def _leaky_relu(x, slope=0.2):
    return jnp.where(x > 0, x, slope * x)


def _round_up(n, m):
    return ((n + m - 1) // m) * m


def mixing_discriminator_kernel(x_ref,
                                w1_ref, b1_ref,
                                w2_ref, b2_ref,
                                w3_ref, b3_ref,
                                w4_ref, b4_ref,
                                o_ref):
    # Layer 1: Linear(n_outputs -> H) + LeakyReLU(0.2)   [Dropout(0.3) = identity]
    h = jnp.dot(x_ref[...], w1_ref[...], preferred_element_type=jnp.float32)
    h = _leaky_relu(h + b1_ref[...])
    # Layer 2: Linear(H -> H/2) + LeakyReLU(0.2)         [bf16 MXU operands, f32 acc]
    h = jnp.dot(h.astype(jnp.bfloat16), w2_ref[...], preferred_element_type=jnp.float32)
    h = _leaky_relu(h + b2_ref[...])
    # Layer 3: Linear(H/2 -> H/4) + LeakyReLU(0.2)
    h = jnp.dot(h.astype(jnp.bfloat16), w3_ref[...], preferred_element_type=jnp.float32)
    h = _leaky_relu(h + b3_ref[...])
    # Layer 4: Linear(H/4 -> 1) + Sigmoid.  N=1 matmul wastes the MXU, so do a VPU
    # multiply + lane reduce instead; sigmoid via EUP exp + reciprocal.
    logits = jnp.sum(h * w4_ref[...], axis=-1, keepdims=True) + b4_ref[...]
    o_ref[...] = pl.reciprocal(1.0 + jnp.exp(-logits), approx=True)
    # TODO(synk): Dropout(0.3) layers are eval-mode identity here; train-mode
    # stochastic masking would use pltpu.prng_seed / pltpu.prng_random_bits.


def mixing_discriminator_forward(x, params, *, block_m=512):
    """x: (B, n_outputs) float32.  params: dict with w{1..4} (in,out) and b{1..4} (1,out)."""
    B, n_outputs = x.shape
    H = params["w1"].shape[1]
    H2, H4 = H // 2, H // 4

    # Batch tile: multiple of 8 sublanes, at most `block_m` rows per grid step.
    TM = min(block_m, _round_up(B, 8))
    B_pad = _round_up(B, TM)
    if B_pad != B:
        x = jnp.pad(x, ((0, B_pad - B), (0, 0)))

    # bf16 MXU operands (cast once, outside the kernel); f32 biases / last layer.
    x_bf16 = x.astype(jnp.bfloat16)
    w1 = params["w1"].astype(jnp.bfloat16)
    w2 = params["w2"].astype(jnp.bfloat16)
    w3 = params["w3"].astype(jnp.bfloat16)
    w4_row = params["w4"].reshape(1, H4).astype(jnp.float32)   # stays on the VPU
    b1 = params["b1"].astype(jnp.float32)
    b2 = params["b2"].astype(jnp.float32)
    b3 = params["b3"].astype(jnp.float32)
    b4 = params["b4"].astype(jnp.float32)

    grid = (B_pad // TM,)

    # Explicit per-operand specs (fixes the late-binding list-comprehension lambdas).
    in_specs = [
        pl.BlockSpec((TM, n_outputs), lambda i: (i, 0)),   # x: batch-tiled, double-buffered
        pl.BlockSpec((n_outputs, H), lambda i: (0, 0)),    # w1 (VMEM-resident)
        pl.BlockSpec((1, H),        lambda i: (0, 0)),     # b1
        pl.BlockSpec((H, H2),       lambda i: (0, 0)),     # w2
        pl.BlockSpec((1, H2),       lambda i: (0, 0)),     # b2
        pl.BlockSpec((H2, H4),      lambda i: (0, 0)),     # w3
        pl.BlockSpec((1, H4),       lambda i: (0, 0)),     # b3
        pl.BlockSpec((1, H4),       lambda i: (0, 0)),     # w4 as row vector
        pl.BlockSpec((1, 1),        lambda i: (0, 0)),     # b4
    ]
    out_spec = pl.BlockSpec((TM, 1), lambda i: (i, 0))

    # Advisory cost estimate for XLA scheduling.
    flops = 2 * B_pad * (n_outputs * H + H * H2 + H2 * H4 + H4)
    bytes_accessed = (x_bf16.size * 2
                      + (w1.size + w2.size + w3.size) * 2
                      + (w4_row.size + b1.size + b2.size + b3.size + b4.size) * 4
                      + B_pad * 4)
    cost = pl.CostEstimate(flops=flops, transcendentals=2 * B_pad,
                           bytes_accessed=bytes_accessed)

    # Explicit VMEM budget: double-buffered x tile + resident weights + live f32
    # activations + output; leave headroom under v7x's 64 MiB physical VMEM.
    vmem_need = (2 * TM * n_outputs * 2                                     # x (bf16, 2 bufs)
                 + (n_outputs * H + H * H2 + H2 * H4) * 2                   # bf16 weights
                 + (H4 + H + H2 + H4 + 1) * 4                               # w4_row + biases
                 + 2 * TM * H * 4                                           # live f32 activations
                 + 2 * TM * 4)                                              # output (2 bufs)
    vmem_limit = min(48 << 20, max(16 << 20, 2 * vmem_need))

    out = pl.pallas_call(
        mixing_discriminator_kernel,
        out_shape=jax.ShapeDtypeStruct((B_pad, 1), jnp.float32),
        grid=grid,
        in_specs=in_specs,
        out_specs=out_spec,
        compiler_params=pltpu.CompilerParams(
            dimension_semantics=("parallel",),
            vmem_limit_bytes=vmem_limit),
        cost_estimate=cost,
    )(x_bf16, w1, b1, w2, b2, w3, b3, w4_row, b4)
    return out[:B]


def init_params(key, n_outputs, hidden_dim):
    """Deterministic init mirroring nn.Linear default (uniform +/- 1/sqrt(fan_in))."""
    dims = [(n_outputs, hidden_dim),
            (hidden_dim, hidden_dim // 2),
            (hidden_dim // 2, hidden_dim // 4),
            (hidden_dim // 4, 1)]
    params = {}
    keys = jax.random.split(key, 2 * len(dims))
    for i, (fan_in, fan_out) in enumerate(dims):
        bound = 1.0 / jnp.sqrt(jnp.float32(fan_in))
        params[f"w{i+1}"] = jax.random.uniform(
            keys[2 * i], (fan_in, fan_out), jnp.float32, -bound, bound)
        params[f"b{i+1}"] = jax.random.uniform(
            keys[2 * i + 1], (1, fan_out), jnp.float32, -bound, bound)
    return params


def reference_forward(x, params):
    """Pure-JAX reference with the same bf16-operand / f32-accumulate numerics."""
    h = jnp.dot(x.astype(jnp.bfloat16), params["w1"].astype(jnp.bfloat16),
                preferred_element_type=jnp.float32) + params["b1"]
    h = jnp.where(h > 0, h, 0.2 * h)
    h = jnp.dot(h.astype(jnp.bfloat16), params["w2"].astype(jnp.bfloat16),
                preferred_element_type=jnp.float32) + params["b2"]
    h = jnp.where(h > 0, h, 0.2 * h)
    h = jnp.dot(h.astype(jnp.bfloat16), params["w3"].astype(jnp.bfloat16),
                preferred_element_type=jnp.float32) + params["b3"]
    h = jnp.where(h > 0, h, 0.2 * h)
    logits = jnp.dot(h, params["w4"], preferred_element_type=jnp.float32) + params["b4"]
    return jax.nn.sigmoid(logits)


if __name__ == "__main__":
    key = jax.random.PRNGKey(0)
    k_param, k_x = jax.random.split(key)

    batch = 8
    n_outputs = 10     # module default n_outputs=10 (mixing parameter vector)
    hidden_dim = 32    # small hidden for the demo (module default is 256)

    params = init_params(k_param, n_outputs, hidden_dim)
    x = jax.random.normal(k_x, (batch, n_outputs), jnp.float32)

    out = mixing_discriminator_forward(x, params)
    out = jax.block_until_ready(out)

    ref = reference_forward(x, params)
    assert out.shape == (batch, 1), out.shape
    assert jnp.allclose(out, ref, atol=2e-3, rtol=2e-3), (out, ref)
    print("KERNEL_OK")
</pallas_src>

<mosaic_0001>
module attributes {stable_mosaic.version = 11 : i64} {
  func.func @mixing_discriminator_kernel(%arg0: i32, %arg1: memref<8x10xbf16, #tpu.memory_space<vmem>>, %arg2: memref<10x32xbf16, #tpu.memory_space<vmem>>, %arg3: memref<1x32xf32, #tpu.memory_space<vmem>>, %arg4: memref<32x16xbf16, #tpu.memory_space<vmem>>, %arg5: memref<1x16xf32, #tpu.memory_space<vmem>>, %arg6: memref<16x8xbf16, #tpu.memory_space<vmem>>, %arg7: memref<1x8xf32, #tpu.memory_space<vmem>>, %arg8: memref<1x8xf32, #tpu.memory_space<vmem>>, %arg9: memref<1x1xf32, #tpu.memory_space<vmem>>, %arg10: memref<8x1xf32, #tpu.memory_space<vmem>>) attributes {dimension_semantics = [#tpu.dimension_semantics<parallel>], iteration_bounds = array<i64: 1>, scalar_prefetch = 0 : i64, scratch_operands = 0 : i64, tpu.core_type = #tpu.core_type<tc>, window_params = [{transform_indices = @transform_0, window_bounds = array<i64: 8, 10>}, {pipeline_mode = #tpu.pipeline_mode<synchronous>, transform_indices = @transform_1, window_bounds = array<i64: 10, 32>}, {pipeline_mode = #tpu.pipeline_mode<synchronous>, transform_indices = @transform_2, window_bounds = array<i64: 1, 32>}, {pipeline_mode = #tpu.pipeline_mode<synchronous>, transform_indices = @transform_3, window_bounds = array<i64: 32, 16>}, {pipeline_mode = #tpu.pipeline_mode<synchronous>, transform_indices = @transform_4, window_bounds = array<i64: 1, 16>}, {pipeline_mode = #tpu.pipeline_mode<synchronous>, transform_indices = @transform_5, window_bounds = array<i64: 16, 8>}, {pipeline_mode = #tpu.pipeline_mode<synchronous>, transform_indices = @transform_6, window_bounds = array<i64: 1, 8>}, {pipeline_mode = #tpu.pipeline_mode<synchronous>, transform_indices = @transform_7, window_bounds = array<i64: 1, 8>}, {pipeline_mode = #tpu.pipeline_mode<synchronous>, transform_indices = @transform_8, window_bounds = array<i64: 1, 1>}, {transform_indices = @transform_9, window_bounds = array<i64: 8, 1>}]} {
    %c0 = arith.constant 0 : index
    %c0_0 = arith.constant 0 : index
    %0 = vector.load %arg1[%c0, %c0_0] : memref<8x10xbf16, #tpu.memory_space<vmem>>, vector<8x10xbf16>
    %c0_1 = arith.constant 0 : index
    %c0_2 = arith.constant 0 : index
    %1 = vector.load %arg2[%c0_1, %c0_2] : memref<10x32xbf16, #tpu.memory_space<vmem>>, vector<10x32xbf16>
    %cst = arith.constant dense<0.000000e+00> : vector<8x32xf32>
    %2 = tpu.matmul %0, %1, %cst {dimension_numbers = #tpu.dot_dimension_numbers<[1], [0], [0], [1], [0, 0, 1, 1], [], []>} : vector<8x10xbf16>, vector<10x32xbf16>, vector<8x32xf32> -> vector<8x32xf32>
    %c0_3 = arith.constant 0 : index
    %c0_4 = arith.constant 0 : index
    %3 = vector.load %arg3[%c0_3, %c0_4] : memref<1x32xf32, #tpu.memory_space<vmem>>, vector<1x32xf32>
    %4 = vector.broadcast %3 : vector<1x32xf32> to vector<8x32xf32>
    %5 = arith.addf %2, %4 : vector<8x32xf32>
    %cst_5 = arith.constant 0.000000e+00 : f32
    %6 = vector.broadcast %cst_5 : f32 to vector<8x32xf32>
    %7 = arith.cmpf ogt, %5, %6 : vector<8x32xf32>
    %cst_6 = arith.constant 2.000000e-01 : f32
    %8 = vector.broadcast %cst_6 : f32 to vector<8x32xf32>
    %9 = arith.mulf %8, %5 : vector<8x32xf32>
    %10 = arith.select %7, %5, %9 : vector<8x32xi1>, vector<8x32xf32>
    %11 = arith.truncf %10 : vector<8x32xf32> to vector<8x32xbf16>
    %c0_7 = arith.constant 0 : index
    %c0_8 = arith.constant 0 : index
    %12 = vector.load %arg4[%c0_7, %c0_8] : memref<32x16xbf16, #tpu.memory_space<vmem>>, vector<32x16xbf16>
    %cst_9 = arith.constant dense<0.000000e+00> : vector<8x16xf32>
    %13 = tpu.matmul %11, %12, %cst_9 {dimension_numbers = #tpu.dot_dimension_numbers<[1], [0], [0], [1], [0, 0, 1, 1], [], []>} : vector<8x32xbf16>, vector<32x16xbf16>, vector<8x16xf32> -> vector<8x16xf32>
    %c0_10 = arith.constant 0 : index
    %c0_11 = arith.constant 0 : index
    %14 = vector.load %arg5[%c0_10, %c0_11] : memref<1x16xf32, #tpu.memory_space<vmem>>, vector<1x16xf32>
    %15 = vector.broadcast %14 : vector<1x16xf32> to vector<8x16xf32>
    %16 = arith.addf %13, %15 : vector<8x16xf32>
    %cst_12 = arith.constant 0.000000e+00 : f32
    %17 = vector.broadcast %cst_12 : f32 to vector<8x16xf32>
    %18 = arith.cmpf ogt, %16, %17 : vector<8x16xf32>
    %cst_13 = arith.constant 2.000000e-01 : f32
    %19 = vector.broadcast %cst_13 : f32 to vector<8x16xf32>
    %20 = arith.mulf %19, %16 : vector<8x16xf32>
    %21 = arith.select %18, %16, %20 : vector<8x16xi1>, vector<8x16xf32>
    %22 = arith.truncf %21 : vector<8x16xf32> to vector<8x16xbf16>
    %c0_14 = arith.constant 0 : index
    %c0_15 = arith.constant 0 : index
    %23 = vector.load %arg6[%c0_14, %c0_15] : memref<16x8xbf16, #tpu.memory_space<vmem>>, vector<16x8xbf16>
    %cst_16 = arith.constant dense<0.000000e+00> : vector<8x8xf32>
    %24 = tpu.matmul %22, %23, %cst_16 {dimension_numbers = #tpu.dot_dimension_numbers<[1], [0], [0], [1], [0, 0, 1, 1], [], []>} : vector<8x16xbf16>, vector<16x8xbf16>, vector<8x8xf32> -> vector<8x8xf32>
    %c0_17 = arith.constant 0 : index
    %c0_18 = arith.constant 0 : index
    %25 = vector.load %arg7[%c0_17, %c0_18] : memref<1x8xf32, #tpu.memory_space<vmem>>, vector<1x8xf32>
    %26 = vector.broadcast %25 : vector<1x8xf32> to vector<8x8xf32>
    %27 = arith.addf %24, %26 : vector<8x8xf32>
    %cst_19 = arith.constant 0.000000e+00 : f32
    %28 = vector.broadcast %cst_19 : f32 to vector<8x8xf32>
    %29 = arith.cmpf ogt, %27, %28 : vector<8x8xf32>
    %cst_20 = arith.constant 2.000000e-01 : f32
    %30 = vector.broadcast %cst_20 : f32 to vector<8x8xf32>
    %31 = arith.mulf %30, %27 : vector<8x8xf32>
    %32 = arith.select %29, %27, %31 : vector<8x8xi1>, vector<8x8xf32>
    %c0_21 = arith.constant 0 : index
    %c0_22 = arith.constant 0 : index
    %33 = vector.load %arg8[%c0_21, %c0_22] : memref<1x8xf32, #tpu.memory_space<vmem>>, vector<1x8xf32>
    %34 = vector.broadcast %33 : vector<1x8xf32> to vector<8x8xf32>
    %35 = arith.mulf %32, %34 : vector<8x8xf32>
    %cst_23 = arith.constant dense<0.000000e+00> : vector<8xf32>
    %36 = vector.multi_reduction <add>, %35, %cst_23 [1] : vector<8x8xf32> to vector<8xf32>
    %37 = vector.shape_cast %36 : vector<8xf32> to vector<8x1xf32>
    %c0_24 = arith.constant 0 : index
    %c0_25 = arith.constant 0 : index
    %38 = vector.load %arg9[%c0_24, %c0_25] : memref<1x1xf32, #tpu.memory_space<vmem>>, vector<1x1xf32>
    %39 = vector.broadcast %38 : vector<1x1xf32> to vector<8x1xf32>
    %40 = arith.addf %37, %39 : vector<8x1xf32>
    %cst_26 = arith.constant 0.000000e+00 : f32
    %41 = vector.broadcast %cst_26 : f32 to vector<8x1xf32>
    %42 = arith.subf %41, %40 : vector<8x1xf32>
    %43 = math.exp %42 : vector<8x1xf32>
    %cst_27 = arith.constant 1.000000e+00 : f32
    %44 = vector.broadcast %cst_27 : f32 to vector<8x1xf32>
    %45 = arith.addf %44, %43 : vector<8x1xf32>
    %46 = tpu.reciprocal %45 {approx = true} : vector<8x1xf32> -> vector<8x1xf32>
    %c0_28 = arith.constant 0 : index
    %c0_29 = arith.constant 0 : index
    %47 = vector.load %arg10[%c0_28, %c0_29] : memref<8x1xf32, #tpu.memory_space<vmem>>, vector<8x1xf32>
    tpu.vector_store %arg10[%c0_28, %c0_29], %46 {strides = array<i32>} : memref<8x1xf32, #tpu.memory_space<vmem>>, vector<8x1xf32>,
    return
  }
  func.func @transform_0(%arg0: i32) -> (i32, i32) {
    %c0_i32 = arith.constant 0 : i32
    %c0_i32_0 = arith.constant 0 : i32
    return %arg0, %c0_i32 : i32, i32
  }
  func.func @transform_1(%arg0: i32) -> (i32, i32) {
    %c0_i32 = arith.constant 0 : i32
    %c0_i32_0 = arith.constant 0 : i32
    %c0_i32_1 = arith.constant 0 : i32
    return %c0_i32, %c0_i32_0 : i32, i32
  }
  func.func @transform_2(%arg0: i32) -> (i32, i32) {
    %c0_i32 = arith.constant 0 : i32
    %c0_i32_0 = arith.constant 0 : i32
    %c0_i32_1 = arith.constant 0 : i32
    return %c0_i32, %c0_i32_0 : i32, i32
  }
  func.func @transform_3(%arg0: i32) -> (i32, i32) {
    %c0_i32 = arith.constant 0 : i32
    %c0_i32_0 = arith.constant 0 : i32
    %c0_i32_1 = arith.constant 0 : i32
    return %c0_i32, %c0_i32_0 : i32, i32
  }
  func.func @transform_4(%arg0: i32) -> (i32, i32) {
    %c0_i32 = arith.constant 0 : i32
    %c0_i32_0 = arith.constant 0 : i32
    %c0_i32_1 = arith.constant 0 : i32
    return %c0_i32, %c0_i32_0 : i32, i32
  }
  func.func @transform_5(%arg0: i32) -> (i32, i32) {
    %c0_i32 = arith.constant 0 : i32
    %c0_i32_0 = arith.constant 0 : i32
    %c0_i32_1 = arith.constant 0 : i32
    return %c0_i32, %c0_i32_0 : i32, i32
  }
  func.func @transform_6(%arg0: i32) -> (i32, i32) {
    %c0_i32 = arith.constant 0 : i32
    %c0_i32_0 = arith.constant 0 : i32
    %c0_i32_1 = arith.constant 0 : i32
    return %c0_i32, %c0_i32_0 : i32, i32
  }
  func.func @transform_7(%arg0: i32) -> (i32, i32) {
    %c0_i32 = arith.constant 0 : i32
    %c0_i32_0 = arith.constant 0 : i32
    %c0_i32_1 = arith.constant 0 : i32
    return %c0_i32, %c0_i32_0 : i32, i32
  }
  func.func @transform_8(%arg0: i32) -> (i32, i32) {
    %c0_i32 = arith.constant 0 : i32
    %c0_i32_0 = arith.constant 0 : i32
    %c0_i32_1 = arith.constant 0 : i32
    return %c0_i32, %c0_i32_0 : i32, i32
  }
  func.func @transform_9(%arg0: i32) -> (i32, i32) {
    %c0_i32 = arith.constant 0 : i32
    %c0_i32_0 = arith.constant 0 : i32
    return %arg0, %c0_i32 : i32, i32
  }
}

</mosaic_0001>

<bundles_post_ra>
// kernel: tpu_custom_call.1
= control target key start
LH: loop header
LB: loop body
LE: loop exit
PB: predicated region body
PF: predicated region fallthrough
CT: control target
= control target key end

     0   :  { %vm54_vm0 = vcmask 1044480   ;;  %v315_v0 = vmov 0.0   ;;  %vm316_vm1 = vmmov 0   ;;  %vm50_vm2 = vcmask 80896   ;;  %s400_s1 = inlined_call_operand.vmem [shape: bf16[10,32], index: 1, kind: input, shape index: {}]   ;;  %s401_s0 = inlined_call_operand.vmem [shape: bf16[8,10], index: 0, kind: input, shape index: {}]   ;;  %s402_s3 = inlined_call_operand.vmem [shape: bf16[32,16], index: 3, kind: input, shape index: {}]   ;;  %s403_s2 = inlined_call_operand.vmem [shape: f32[1,32], index: 2, kind: input, shape index: {}]   ;;  %s404_s5 = inlined_call_operand.vmem [shape: bf16[16,8], index: 5, kind: input, shape index: {}]   ;;  %s405_s4 = inlined_call_operand.vmem [shape: f32[1,16], index: 4, kind: input, shape index: {}]   ;;  %s406_s8 = inlined_call_operand.<no memory space> [shape: f32[1,1], index: 8, kind: input, shape index: {}]   ;;  %s407_s6 = inlined_call_operand.vmem [shape: f32[1,8], index: 6, kind: input, shape index: {}]   ;;  %s408_s7 = inlined_call_operand.vmem [shape: f32[1,8], index: 7, kind: input, shape index: {}]   ;;  %s409_s9 = inlined_call_operand.vmem [shape: f32[8,1], index: 9, kind: output, shape index: {}]  }
   0x1   :  { %285 = vmatprep.subr.bf16.mxu0 %v315_v0  ;;  %v307_v1 = vld [vmem:[%s400_s1] sm:$0x1f]   ;;  %287 = vmatprep.mubr.msk.bf16.mxu0 %vm316_vm1, %v315_v0  ;;  %v309_v5 = vld [vmem:[%s402_s3 + $0x8] sm:$0xff]   ;;  %vm125_vm4 = vcmask 261120   ;;  %vm188_vm6 = vcmask 130048   ;;  %v14_v25 = vstv %s406_s8  ;;  %vm243_vm8 = vcmask 64512  }
   0x2   :  { %291 = vmatprep.subr.bf16.mxu1 %v315_v0  ;;  %295 = vmatprep.mubr.msk.bf16.mxu1 %vm316_vm1, %v315_v0  ;;  %v56_v2 = vsel %vm54_vm0, %v307_v1, 0  ;;  %v35_v3 = vld [vmem:[%s401_s0] sm:$0xf]  ;;  %15 = vst [vmem:[#allocation2] sm:$0x1] %v14_v25  ;;  %vm260_vm9 = vcmask 7168  }
   0x3   :  { %286 = vmatpush3.bf16.msra.mxu0 %v56_v2  ;;  %v308_v4 = vld [vmem:[%s402_s3] sm:$0xff]  }
   0x4   :  { %299 = vmatprep.subr.bf16.mxu0 %v315_v0  ;;  %292 = vmatpush3.bf16.msra.mxu1 %v308_v4  ;;  %v266_v6 = vld [vmem:[%s403_s2] ss:$0 sm:$0xff] }
   0x5   :  { %293 = vmatprep.subr.bf16.mxu1 %v315_v0  ;;  %v310_v15 = vld [vmem:[%s404_s5] sm:$0xff]  }
   0x6   :  { %288 = vmatmul.mubr.msk.bf16.vlgmr.msra.gmra.mrb[0].mxu0 %vm50_vm2, %v35_v3  ;;  %v269_v16 = vld [vmem:[%s405_s4] ss:$0 sm:$0xff] }
   0x7   :  { %301 = vmatprep.mubr.msk.bf16.mxu0 %vm316_vm1, %v315_v0  ;;  %300 = vmatpush3.bf16.msra.mxu0 %v310_v15  ;;  %v273_v26 = vld [vmem:[%s407_s6] ss:$0 sm:$0xff] }
   0x8   :  { %294 = vmatpush3.bf16.msra.mxu1 %v309_v5  ;;  %v276_v33 = vld [vmem:[%s408_s7] ss:$0 sm:$0xff] }
   0x9   :  { %v277_v37 = vld [vmem:[#allocation2] ss:$0 sm:$0xff] }
  0xd9   :  { %v92_v7 = vpop.f32.mrb[0].mxu0 }
  0xda   :  { %v93_v8 = vadd.f32 %v266_v6, %v92_v7  ;;  %v289_v9 = vpop.f32.mrb[1].mxu0 }
  0xdb   :  { %v95_v10 = vpop.f32.mrb[2].mxu0 }
  0xdc   :  { %vm98_vm3 = vcmp.gt.f32.partialorder %v93_v8, 0.0  ;;  %v99_v11 = vmul.f32 0.2, %v93_v8  ;;  %v290_v12 = vpop.f32.mrb[3].mxu0 }
  0xde   :  { %v100_v13 = vsel %vm98_vm3, %v93_v8, %v99_v11 }
  0xdf   :  { %v101_v14 = vpack.c.bf16 %v100_v13, %v100_v13 }
  0xe1   :  { %296 = vmatmul.mubr.msk.bf16.vlgmr.msra.gmra.mrb[0].mxu1 %vm125_vm4, %v101_v14 }
 0x1b4   :  { %v163_v17 = vpop.f32.mrb[0].mxu1 }
 0x1b5   :  { %v164_v18 = vadd.f32 %v269_v16, %v163_v17  ;;  %v297_v19 = vpop.f32.mrb[1].mxu1 }
 0x1b6   :  { %v166_v20 = vpop.f32.mrb[2].mxu1 }
 0x1b7   :  { %vm169_vm5 = vcmp.gt.f32.partialorder %v164_v18, 0.0  ;;  %v170_v21 = vmul.f32 0.2, %v164_v18  ;;  %v298_v22 = vpop.f32.mrb[3].mxu1 }
 0x1b9   :  { %v171_v23 = vsel %vm169_vm5, %v164_v18, %v170_v21 }
 0x1ba   :  { %v172_v24 = vpack.c.bf16 %v171_v23, %v171_v23 }
 0x1bc   :  { %302 = vmatmul.mubr.msk.bf16.vlgmr.msra.gmra.mrb[4].mxu0 %vm188_vm6, %v172_v24 }
 0x28f   :  { %v226_v27 = vpop.f32.mrb[4].mxu0 }
 0x290   :  { %v227_v28 = vadd.f32 %v273_v26, %v226_v27  ;;  %v303_v29 = vpop.f32.mrb[5].mxu0 }
 0x291   :  { %v229_v30 = vpop.f32.mrb[6].mxu0 }
 0x292   :  { %v233_v31 = vmul.f32 0.2, %v227_v28  ;;  %v304_v32 = vpop.f32.mrb[7].mxu0  ;;  %vm232_vm7 = vcmp.gt.f32.partialorder %v227_v28, 0.0 }
 0x294   :  { %v234_v34 = vsel %vm232_vm7, %v227_v28, %v233_v31 }
 0x295   :  { %v242_v35 = vmul.f32 %v276_v33, %v234_v34 }
 0x297   :  { %v244_v36 = vsel %vm243_vm8, %v242_v35, 0.0 }
 0x298   :  { %245 = vadd.xlane.f32.xlu0 %v244_v36 }
 0x325   :  { %v246_v38 = vpop.xlane.xlu0 %245 }
 0x326   :  { %v254_v39 = vadd.f32 %v277_v37, %v246_v38 }
 0x328   :  { %v255_v40 = vsub.f32 0.0, %v254_v39 }
 0x32a   :  { %v256_v41 = vmul.f32 1.442695, %v255_v40 }
 0x32c   :  { %311 = vpow2.f32 %v256_v41 }
 0x336   :  { %v312_v42 = vpop.eup %311 }
 0x337   :  { %v258_v43 = vadd.f32 1.0, %v312_v42 }
 0x339   :  { %313 = vrcp.f32 %v258_v43 }
 0x343   :  { %v314_v44 = vpop.eup %313 }
 0x344   :  { %261 = vst.msk [vmem:[%s409_s9] sm:$0xff] %vm260_vm9, %v314_v44 }

</bundles_post_ra>
